<compile_context>
chip_gen: v5e
topology: v5e:2x2
jax: 0.10.0
libtpu: 0.0.40
codegen_flags: <defaults>
</compile_context>

<pallas_src>
import jax
import jax.numpy as jnp
from jax.experimental import pallas as pl
from jax.experimental.pallas import tpu as pltpu

LANE = 128      # f32 lane width
SUBLANE = 8     # f32 sublane width


def _round_up(x, m):
    return (x + m - 1) // m * m


# ----------------------------------------------------------------------------
# Kernel
# ----------------------------------------------------------------------------
def _make_rnn_kernel(num_layers, seq_len, tile_b, i_pad, h_pad):
    """Fused multi-layer RNN + final Linear for static (L, T, tile_b, I_pad, H_pad)."""

    def kernel(*refs):
        # refs = x_ref, [w_ih, w_hh, b] * L, w_fc, b_fc, o_ref
        x_ref = refs[0]
        lrefs = refs[1:1 + 3 * num_layers]
        wfc_ref = refs[1 + 3 * num_layers]
        bfc_ref = refs[2 + 3 * num_layers]
        o_ref = refs[3 + 3 * num_layers]

        # Layer 0 input: whole time-major slab collapsed to one matrix.
        layer_in = x_ref[...].reshape(seq_len * tile_b, i_pad)

        h = None
        for l in range(num_layers):
            w_ih = lrefs[3 * l + 0][...]
            w_hh = lrefs[3 * l + 1][...]
            b = lrefs[3 * l + 2][...]                 # [1, h_pad], b_ih + b_hh

            # One big MXU matmul for all timesteps; bias folded in once.
            pre_x = (
                jnp.dot(layer_in, w_ih, preferred_element_type=jnp.float32) + b
            ).reshape(seq_len, tile_b, h_pad)

            # Sequential recurrence: only the W_hh matmul + tanh per step.
            h = jnp.zeros((tile_b, h_pad), jnp.float32)
            outs = []
            for t in range(seq_len):                  # unrolled (static T)
                h = jnp.tanh(
                    pre_x[t]
                    + jnp.dot(h, w_hh, preferred_element_type=jnp.float32)
                )
                if l + 1 < num_layers:
                    outs.append(h)

            if l + 1 < num_layers:
                layer_in = jnp.concatenate(outs, axis=0)   # [T*tile_b, h_pad]

        # Final Linear on the last timestep of the top layer; lane-dense store.
        out = (
            jnp.dot(h, wfc_ref[...], preferred_element_type=jnp.float32)
            + bfc_ref[...]
        )
        o_ref[...] = out.astype(o_ref.dtype)

    return kernel


# ----------------------------------------------------------------------------
# Wrapper
# ----------------------------------------------------------------------------
def rnn_forward(x, params, *, max_tile_b=256):
    """x: [B, T, I] float32.

    params = (layers, (w_fc, b_fc)) where
      layers[l] = (w_ih [in, H], w_hh [H, H], b [1, H])  (b = b_ih + b_hh),
      w_fc [H, O], b_fc [1, O].
    Returns [B, O] float32.
    """
    layers, (wfc, bfc) = params
    B, T, I = x.shape
    H = layers[0][1].shape[0]
    O = wfc.shape[1]
    num_layers = len(layers)

    i_pad = _round_up(I, LANE)
    h_pad = _round_up(H, LANE)
    o_pad = _round_up(O, LANE)
    tile_b = min(_round_up(B, SUBLANE), max_tile_b)
    b_pad = _round_up(B, tile_b)

    # Time-major, lane/row padded input slab: [T, B_pad, I_pad].
    xp = jnp.zeros((T, b_pad, i_pad), jnp.float32)
    xp = xp.at[:, :B, :I].set(jnp.transpose(x, (1, 0, 2)).astype(jnp.float32))

    def pad2(a, rows, cols):
        return jnp.zeros((rows, cols), jnp.float32).at[: a.shape[0], : a.shape[1]].set(a)

    inputs = [xp]
    in_specs = [pl.BlockSpec((T, tile_b, i_pad), lambda i: (0, i, 0))]

    for l, (w_ih, w_hh, b) in enumerate(layers):
        in_dim = i_pad if l == 0 else h_pad
        inputs += [pad2(w_ih, in_dim, h_pad), pad2(w_hh, h_pad, h_pad), pad2(b, 1, h_pad)]
        in_specs += [
            pl.BlockSpec((in_dim, h_pad), lambda i: (0, 0)),
            pl.BlockSpec((h_pad, h_pad), lambda i: (0, 0)),
            pl.BlockSpec((1, h_pad), lambda i: (0, 0)),
        ]

    inputs += [pad2(wfc, h_pad, o_pad), pad2(bfc, 1, o_pad)]
    in_specs += [
        pl.BlockSpec((h_pad, o_pad), lambda i: (0, 0)),
        pl.BlockSpec((1, o_pad), lambda i: (0, 0)),
    ]

    kernel = _make_rnn_kernel(num_layers, T, tile_b, i_pad, h_pad)

    out_pad = pl.pallas_call(
        kernel,
        out_shape=jax.ShapeDtypeStruct((b_pad, o_pad), jnp.float32),
        grid_spec=pltpu.PrefetchScalarGridSpec(
            num_scalar_prefetch=0,
            grid=(b_pad // tile_b,),
            in_specs=in_specs,
            out_specs=pl.BlockSpec((tile_b, o_pad), lambda i: (i, 0)),
        ),
        compiler_params=pltpu.CompilerParams(
            dimension_semantics=("parallel",)),
    )(*inputs)

    return out_pad[:B, :O]


# ----------------------------------------------------------------------------
# Params + pure-JAX reference
# ----------------------------------------------------------------------------
def make_params(key, input_size, hidden_size, output_size, num_layers):
    keys = jax.random.split(key, 4 * num_layers + 2)
    bound = hidden_size ** -0.5
    layers = []
    ki = 0
    for l in range(num_layers):
        in_dim = input_size if l == 0 else hidden_size
        w_ih = jax.random.uniform(keys[ki], (in_dim, hidden_size), jnp.float32, -bound, bound); ki += 1
        w_hh = jax.random.uniform(keys[ki], (hidden_size, hidden_size), jnp.float32, -bound, bound); ki += 1
        b_ih = jax.random.uniform(keys[ki], (1, hidden_size), jnp.float32, -bound, bound); ki += 1
        b_hh = jax.random.uniform(keys[ki], (1, hidden_size), jnp.float32, -bound, bound); ki += 1
        layers.append((w_ih, w_hh, b_ih + b_hh))
    w_fc = jax.random.uniform(keys[ki], (hidden_size, output_size), jnp.float32, -bound, bound); ki += 1
    b_fc = jax.random.uniform(keys[ki], (1, output_size), jnp.float32, -bound, bound)
    return layers, (w_fc, b_fc)


def rnn_reference(x, params):
    layers, (w_fc, b_fc) = params
    B, T, _ = x.shape
    H = layers[0][1].shape[0]
    hs = [jnp.zeros((B, H), jnp.float32) for _ in layers]
    for t in range(T):
        inp = x[:, t, :]
        for l, (w_ih, w_hh, b) in enumerate(layers):
            hs[l] = jnp.tanh(inp @ w_ih + hs[l] @ w_hh + b)
            inp = hs[l]
    return hs[-1] @ w_fc + b_fc


# ----------------------------------------------------------------------------
if __name__ == "__main__":
    INPUT_SIZE = 64     # CONFIGS['ffn'].input_size  (module-level global in spec)
    HIDDEN_SIZE = 32    # CONFIGS['ffn'].hidden_size
    OUTPUT_SIZE = 16    # num_classes
    NUM_LAYERS = 2
    SEQ_LEN = 8
    BATCH = 8

    key = jax.random.PRNGKey(0)
    kx, kp = jax.random.split(key)
    x = jax.random.normal(kx, (BATCH, SEQ_LEN, INPUT_SIZE), jnp.float32)
    params = make_params(kp, INPUT_SIZE, HIDDEN_SIZE, OUTPUT_SIZE, NUM_LAYERS)

    out = rnn_forward(x, params)
    out = jax.block_until_ready(out)

    ref = rnn_reference(x, params)
    assert out.shape == (BATCH, OUTPUT_SIZE), out.shape
    assert jnp.allclose(out, ref, atol=1e-4, rtol=1e-4), float(jnp.max(jnp.abs(out - ref)))

    print("KERNEL_OK")
</pallas_src>

<mosaic_0001>
module attributes {stable_mosaic.version = 11 : i64} {
  func.func @kernel(%arg0: i32, %arg1: memref<8x8x128xf32, #tpu.memory_space<vmem>>, %arg2: memref<128x128xf32, #tpu.memory_space<vmem>>, %arg3: memref<128x128xf32, #tpu.memory_space<vmem>>, %arg4: memref<1x128xf32, #tpu.memory_space<vmem>>, %arg5: memref<128x128xf32, #tpu.memory_space<vmem>>, %arg6: memref<128x128xf32, #tpu.memory_space<vmem>>, %arg7: memref<1x128xf32, #tpu.memory_space<vmem>>, %arg8: memref<128x128xf32, #tpu.memory_space<vmem>>, %arg9: memref<1x128xf32, #tpu.memory_space<vmem>>, %arg10: memref<8x128xf32, #tpu.memory_space<vmem>>) attributes {dimension_semantics = [#tpu.dimension_semantics<parallel>], iteration_bounds = array<i64: 1>, scalar_prefetch = 0 : i64, scratch_operands = 0 : i64, tpu.core_type = #tpu.core_type<tc>, window_params = [{transform_indices = @transform_0, window_bounds = array<i64: 8, 8, 128>}, {pipeline_mode = #tpu.pipeline_mode<synchronous>, transform_indices = @transform_1, window_bounds = array<i64: 128, 128>}, {pipeline_mode = #tpu.pipeline_mode<synchronous>, transform_indices = @transform_2, window_bounds = array<i64: 128, 128>}, {pipeline_mode = #tpu.pipeline_mode<synchronous>, transform_indices = @transform_3, window_bounds = array<i64: 1, 128>}, {pipeline_mode = #tpu.pipeline_mode<synchronous>, transform_indices = @transform_4, window_bounds = array<i64: 128, 128>}, {pipeline_mode = #tpu.pipeline_mode<synchronous>, transform_indices = @transform_5, window_bounds = array<i64: 128, 128>}, {pipeline_mode = #tpu.pipeline_mode<synchronous>, transform_indices = @transform_6, window_bounds = array<i64: 1, 128>}, {pipeline_mode = #tpu.pipeline_mode<synchronous>, transform_indices = @transform_7, window_bounds = array<i64: 128, 128>}, {pipeline_mode = #tpu.pipeline_mode<synchronous>, transform_indices = @transform_8, window_bounds = array<i64: 1, 128>}, {transform_indices = @transform_9, window_bounds = array<i64: 8, 128>}]} {
    %c0 = arith.constant 0 : index
    %c0_0 = arith.constant 0 : index
    %c0_1 = arith.constant 0 : index
    %0 = vector.load %arg1[%c0, %c0_0, %c0_1] : memref<8x8x128xf32, #tpu.memory_space<vmem>>, vector<8x8x128xf32>
    %1 = vector.shape_cast %0 : vector<8x8x128xf32> to vector<64x128xf32>
    %c0_2 = arith.constant 0 : index
    %c0_3 = arith.constant 0 : index
    %2 = vector.load %arg2[%c0_2, %c0_3] : memref<128x128xf32, #tpu.memory_space<vmem>>, vector<128x128xf32>
    %c0_4 = arith.constant 0 : index
    %c0_5 = arith.constant 0 : index
    %3 = vector.load %arg3[%c0_4, %c0_5] : memref<128x128xf32, #tpu.memory_space<vmem>>, vector<128x128xf32>
    %c0_6 = arith.constant 0 : index
    %c0_7 = arith.constant 0 : index
    %4 = vector.load %arg4[%c0_6, %c0_7] : memref<1x128xf32, #tpu.memory_space<vmem>>, vector<1x128xf32>
    %cst = arith.constant dense<0.000000e+00> : vector<64x128xf32>
    %5 = tpu.matmul %1, %2, %cst {dimension_numbers = #tpu.dot_dimension_numbers<[1], [0], [0], [1], [0, 0, 1, 1], [], []>} : vector<64x128xf32>, vector<128x128xf32>, vector<64x128xf32> -> vector<64x128xf32>
    %6 = vector.broadcast %4 : vector<1x128xf32> to vector<64x128xf32>
    %7 = arith.addf %5, %6 : vector<64x128xf32>
    %8 = vector.shape_cast %7 : vector<64x128xf32> to vector<8x8x128xf32>
    %cst_8 = arith.constant 0.000000e+00 : f32
    %9 = vector.broadcast %cst_8 : f32 to vector<8x128xf32>
    %10 = vector.extract_strided_slice %8 {offsets = [0, 0, 0], sizes = [1, 8, 128], strides = [1, 1, 1]} : vector<8x8x128xf32> to vector<1x8x128xf32>
    %11 = vector.shape_cast %10 : vector<1x8x128xf32> to vector<8x128xf32>
    %cst_9 = arith.constant dense<0.000000e+00> : vector<8x128xf32>
    %12 = tpu.matmul %9, %3, %cst_9 {dimension_numbers = #tpu.dot_dimension_numbers<[1], [0], [0], [1], [0, 0, 1, 1], [], []>} : vector<8x128xf32>, vector<128x128xf32>, vector<8x128xf32> -> vector<8x128xf32>
    %13 = arith.addf %11, %12 : vector<8x128xf32>
    %14 = math.tanh %13 : vector<8x128xf32>
    %15 = vector.extract_strided_slice %8 {offsets = [1, 0, 0], sizes = [1, 8, 128], strides = [1, 1, 1]} : vector<8x8x128xf32> to vector<1x8x128xf32>
    %16 = vector.shape_cast %15 : vector<1x8x128xf32> to vector<8x128xf32>
    %cst_10 = arith.constant dense<0.000000e+00> : vector<8x128xf32>
    %17 = tpu.matmul %14, %3, %cst_10 {dimension_numbers = #tpu.dot_dimension_numbers<[1], [0], [0], [1], [0, 0, 1, 1], [], []>} : vector<8x128xf32>, vector<128x128xf32>, vector<8x128xf32> -> vector<8x128xf32>
    %18 = arith.addf %16, %17 : vector<8x128xf32>
    %19 = math.tanh %18 : vector<8x128xf32>
    %20 = vector.extract_strided_slice %8 {offsets = [2, 0, 0], sizes = [1, 8, 128], strides = [1, 1, 1]} : vector<8x8x128xf32> to vector<1x8x128xf32>
    %21 = vector.shape_cast %20 : vector<1x8x128xf32> to vector<8x128xf32>
    %cst_11 = arith.constant dense<0.000000e+00> : vector<8x128xf32>
    %22 = tpu.matmul %19, %3, %cst_11 {dimension_numbers = #tpu.dot_dimension_numbers<[1], [0], [0], [1], [0, 0, 1, 1], [], []>} : vector<8x128xf32>, vector<128x128xf32>, vector<8x128xf32> -> vector<8x128xf32>
    %23 = arith.addf %21, %22 : vector<8x128xf32>
    %24 = math.tanh %23 : vector<8x128xf32>
    %25 = vector.extract_strided_slice %8 {offsets = [3, 0, 0], sizes = [1, 8, 128], strides = [1, 1, 1]} : vector<8x8x128xf32> to vector<1x8x128xf32>
    %26 = vector.shape_cast %25 : vector<1x8x128xf32> to vector<8x128xf32>
    %cst_12 = arith.constant dense<0.000000e+00> : vector<8x128xf32>
    %27 = tpu.matmul %24, %3, %cst_12 {dimension_numbers = #tpu.dot_dimension_numbers<[1], [0], [0], [1], [0, 0, 1, 1], [], []>} : vector<8x128xf32>, vector<128x128xf32>, vector<8x128xf32> -> vector<8x128xf32>
    %28 = arith.addf %26, %27 : vector<8x128xf32>
    %29 = math.tanh %28 : vector<8x128xf32>
    %30 = vector.extract_strided_slice %8 {offsets = [4, 0, 0], sizes = [1, 8, 128], strides = [1, 1, 1]} : vector<8x8x128xf32> to vector<1x8x128xf32>
    %31 = vector.shape_cast %30 : vector<1x8x128xf32> to vector<8x128xf32>
    %cst_13 = arith.constant dense<0.000000e+00> : vector<8x128xf32>
    %32 = tpu.matmul %29, %3, %cst_13 {dimension_numbers = #tpu.dot_dimension_numbers<[1], [0], [0], [1], [0, 0, 1, 1], [], []>} : vector<8x128xf32>, vector<128x128xf32>, vector<8x128xf32> -> vector<8x128xf32>
    %33 = arith.addf %31, %32 : vector<8x128xf32>
    %34 = math.tanh %33 : vector<8x128xf32>
    %35 = vector.extract_strided_slice %8 {offsets = [5, 0, 0], sizes = [1, 8, 128], strides = [1, 1, 1]} : vector<8x8x128xf32> to vector<1x8x128xf32>
    %36 = vector.shape_cast %35 : vector<1x8x128xf32> to vector<8x128xf32>
    %cst_14 = arith.constant dense<0.000000e+00> : vector<8x128xf32>
    %37 = tpu.matmul %34, %3, %cst_14 {dimension_numbers = #tpu.dot_dimension_numbers<[1], [0], [0], [1], [0, 0, 1, 1], [], []>} : vector<8x128xf32>, vector<128x128xf32>, vector<8x128xf32> -> vector<8x128xf32>
    %38 = arith.addf %36, %37 : vector<8x128xf32>
    %39 = math.tanh %38 : vector<8x128xf32>
    %40 = vector.extract_strided_slice %8 {offsets = [6, 0, 0], sizes = [1, 8, 128], strides = [1, 1, 1]} : vector<8x8x128xf32> to vector<1x8x128xf32>
    %41 = vector.shape_cast %40 : vector<1x8x128xf32> to vector<8x128xf32>
    %cst_15 = arith.constant dense<0.000000e+00> : vector<8x128xf32>
    %42 = tpu.matmul %39, %3, %cst_15 {dimension_numbers = #tpu.dot_dimension_numbers<[1], [0], [0], [1], [0, 0, 1, 1], [], []>} : vector<8x128xf32>, vector<128x128xf32>, vector<8x128xf32> -> vector<8x128xf32>
    %43 = arith.addf %41, %42 : vector<8x128xf32>
    %44 = math.tanh %43 : vector<8x128xf32>
    %45 = vector.extract_strided_slice %8 {offsets = [7, 0, 0], sizes = [1, 8, 128], strides = [1, 1, 1]} : vector<8x8x128xf32> to vector<1x8x128xf32>
    %46 = vector.shape_cast %45 : vector<1x8x128xf32> to vector<8x128xf32>
    %cst_16 = arith.constant dense<0.000000e+00> : vector<8x128xf32>
    %47 = tpu.matmul %44, %3, %cst_16 {dimension_numbers = #tpu.dot_dimension_numbers<[1], [0], [0], [1], [0, 0, 1, 1], [], []>} : vector<8x128xf32>, vector<128x128xf32>, vector<8x128xf32> -> vector<8x128xf32>
    %48 = arith.addf %46, %47 : vector<8x128xf32>
    %49 = math.tanh %48 : vector<8x128xf32>
    %50 = tpu.concatenate %14, %19, %24, %29, %34, %39, %44, %49 in 0 : vector<8x128xf32>, vector<8x128xf32>, vector<8x128xf32>, vector<8x128xf32>, vector<8x128xf32>, vector<8x128xf32>, vector<8x128xf32>, vector<8x128xf32> -> vector<64x128xf32>
    %c0_17 = arith.constant 0 : index
    %c0_18 = arith.constant 0 : index
    %51 = vector.load %arg5[%c0_17, %c0_18] : memref<128x128xf32, #tpu.memory_space<vmem>>, vector<128x128xf32>
    %c0_19 = arith.constant 0 : index
    %c0_20 = arith.constant 0 : index
    %52 = vector.load %arg6[%c0_19, %c0_20] : memref<128x128xf32, #tpu.memory_space<vmem>>, vector<128x128xf32>
    %c0_21 = arith.constant 0 : index
    %c0_22 = arith.constant 0 : index
    %53 = vector.load %arg7[%c0_21, %c0_22] : memref<1x128xf32, #tpu.memory_space<vmem>>, vector<1x128xf32>
    %cst_23 = arith.constant dense<0.000000e+00> : vector<64x128xf32>
    %54 = tpu.matmul %50, %51, %cst_23 {dimension_numbers = #tpu.dot_dimension_numbers<[1], [0], [0], [1], [0, 0, 1, 1], [], []>} : vector<64x128xf32>, vector<128x128xf32>, vector<64x128xf32> -> vector<64x128xf32>
    %55 = vector.broadcast %53 : vector<1x128xf32> to vector<64x128xf32>
    %56 = arith.addf %54, %55 : vector<64x128xf32>
    %57 = vector.shape_cast %56 : vector<64x128xf32> to vector<8x8x128xf32>
    %cst_24 = arith.constant 0.000000e+00 : f32
    %58 = vector.broadcast %cst_24 : f32 to vector<8x128xf32>
    %59 = vector.extract_strided_slice %57 {offsets = [0, 0, 0], sizes = [1, 8, 128], strides = [1, 1, 1]} : vector<8x8x128xf32> to vector<1x8x128xf32>
    %60 = vector.shape_cast %59 : vector<1x8x128xf32> to vector<8x128xf32>
    %cst_25 = arith.constant dense<0.000000e+00> : vector<8x128xf32>
    %61 = tpu.matmul %58, %52, %cst_25 {dimension_numbers = #tpu.dot_dimension_numbers<[1], [0], [0], [1], [0, 0, 1, 1], [], []>} : vector<8x128xf32>, vector<128x128xf32>, vector<8x128xf32> -> vector<8x128xf32>
    %62 = arith.addf %60, %61 : vector<8x128xf32>
    %63 = math.tanh %62 : vector<8x128xf32>
    %64 = vector.extract_strided_slice %57 {offsets = [1, 0, 0], sizes = [1, 8, 128], strides = [1, 1, 1]} : vector<8x8x128xf32> to vector<1x8x128xf32>
    %65 = vector.shape_cast %64 : vector<1x8x128xf32> to vector<8x128xf32>
    %cst_26 = arith.constant dense<0.000000e+00> : vector<8x128xf32>
    %66 = tpu.matmul %63, %52, %cst_26 {dimension_numbers = #tpu.dot_dimension_numbers<[1], [0], [0], [1], [0, 0, 1, 1], [], []>} : vector<8x128xf32>, vector<128x128xf32>, vector<8x128xf32> -> vector<8x128xf32>
    %67 = arith.addf %65, %66 : vector<8x128xf32>
    %68 = math.tanh %67 : vector<8x128xf32>
    %69 = vector.extract_strided_slice %57 {offsets = [2, 0, 0], sizes = [1, 8, 128], strides = [1, 1, 1]} : vector<8x8x128xf32> to vector<1x8x128xf32>
    %70 = vector.shape_cast %69 : vector<1x8x128xf32> to vector<8x128xf32>
    %cst_27 = arith.constant dense<0.000000e+00> : vector<8x128xf32>
    %71 = tpu.matmul %68, %52, %cst_27 {dimension_numbers = #tpu.dot_dimension_numbers<[1], [0], [0], [1], [0, 0, 1, 1], [], []>} : vector<8x128xf32>, vector<128x128xf32>, vector<8x128xf32> -> vector<8x128xf32>
    %72 = arith.addf %70, %71 : vector<8x128xf32>
    %73 = math.tanh %72 : vector<8x128xf32>
    %74 = vector.extract_strided_slice %57 {offsets = [3, 0, 0], sizes = [1, 8, 128], strides = [1, 1, 1]} : vector<8x8x128xf32> to vector<1x8x128xf32>
    %75 = vector.shape_cast %74 : vector<1x8x128xf32> to vector<8x128xf32>
    %cst_28 = arith.constant dense<0.000000e+00> : vector<8x128xf32>
    %76 = tpu.matmul %73, %52, %cst_28 {dimension_numbers = #tpu.dot_dimension_numbers<[1], [0], [0], [1], [0, 0, 1, 1], [], []>} : vector<8x128xf32>, vector<128x128xf32>, vector<8x128xf32> -> vector<8x128xf32>
    %77 = arith.addf %75, %76 : vector<8x128xf32>
    %78 = math.tanh %77 : vector<8x128xf32>
    %79 = vector.extract_strided_slice %57 {offsets = [4, 0, 0], sizes = [1, 8, 128], strides = [1, 1, 1]} : vector<8x8x128xf32> to vector<1x8x128xf32>
    %80 = vector.shape_cast %79 : vector<1x8x128xf32> to vector<8x128xf32>
    %cst_29 = arith.constant dense<0.000000e+00> : vector<8x128xf32>
    %81 = tpu.matmul %78, %52, %cst_29 {dimension_numbers = #tpu.dot_dimension_numbers<[1], [0], [0], [1], [0, 0, 1, 1], [], []>} : vector<8x128xf32>, vector<128x128xf32>, vector<8x128xf32> -> vector<8x128xf32>
    %82 = arith.addf %80, %81 : vector<8x128xf32>
    %83 = math.tanh %82 : vector<8x128xf32>
    %84 = vector.extract_strided_slice %57 {offsets = [5, 0, 0], sizes = [1, 8, 128], strides = [1, 1, 1]} : vector<8x8x128xf32> to vector<1x8x128xf32>
    %85 = vector.shape_cast %84 : vector<1x8x128xf32> to vector<8x128xf32>
    %cst_30 = arith.constant dense<0.000000e+00> : vector<8x128xf32>
    %86 = tpu.matmul %83, %52, %cst_30 {dimension_numbers = #tpu.dot_dimension_numbers<[1], [0], [0], [1], [0, 0, 1, 1], [], []>} : vector<8x128xf32>, vector<128x128xf32>, vector<8x128xf32> -> vector<8x128xf32>
    %87 = arith.addf %85, %86 : vector<8x128xf32>
    %88 = math.tanh %87 : vector<8x128xf32>
    %89 = vector.extract_strided_slice %57 {offsets = [6, 0, 0], sizes = [1, 8, 128], strides = [1, 1, 1]} : vector<8x8x128xf32> to vector<1x8x128xf32>
    %90 = vector.shape_cast %89 : vector<1x8x128xf32> to vector<8x128xf32>
    %cst_31 = arith.constant dense<0.000000e+00> : vector<8x128xf32>
    %91 = tpu.matmul %88, %52, %cst_31 {dimension_numbers = #tpu.dot_dimension_numbers<[1], [0], [0], [1], [0, 0, 1, 1], [], []>} : vector<8x128xf32>, vector<128x128xf32>, vector<8x128xf32> -> vector<8x128xf32>
    %92 = arith.addf %90, %91 : vector<8x128xf32>
    %93 = math.tanh %92 : vector<8x128xf32>
    %94 = vector.extract_strided_slice %57 {offsets = [7, 0, 0], sizes = [1, 8, 128], strides = [1, 1, 1]} : vector<8x8x128xf32> to vector<1x8x128xf32>
    %95 = vector.shape_cast %94 : vector<1x8x128xf32> to vector<8x128xf32>
    %cst_32 = arith.constant dense<0.000000e+00> : vector<8x128xf32>
    %96 = tpu.matmul %93, %52, %cst_32 {dimension_numbers = #tpu.dot_dimension_numbers<[1], [0], [0], [1], [0, 0, 1, 1], [], []>} : vector<8x128xf32>, vector<128x128xf32>, vector<8x128xf32> -> vector<8x128xf32>
    %97 = arith.addf %95, %96 : vector<8x128xf32>
    %98 = math.tanh %97 : vector<8x128xf32>
    %c0_33 = arith.constant 0 : index
    %c0_34 = arith.constant 0 : index
    %99 = vector.load %arg8[%c0_33, %c0_34] : memref<128x128xf32, #tpu.memory_space<vmem>>, vector<128x128xf32>
    %cst_35 = arith.constant dense<0.000000e+00> : vector<8x128xf32>
    %100 = tpu.matmul %98, %99, %cst_35 {dimension_numbers = #tpu.dot_dimension_numbers<[1], [0], [0], [1], [0, 0, 1, 1], [], []>} : vector<8x128xf32>, vector<128x128xf32>, vector<8x128xf32> -> vector<8x128xf32>
    %c0_36 = arith.constant 0 : index
    %c0_37 = arith.constant 0 : index
    %101 = vector.load %arg9[%c0_36, %c0_37] : memref<1x128xf32, #tpu.memory_space<vmem>>, vector<1x128xf32>
    %102 = vector.broadcast %101 : vector<1x128xf32> to vector<8x128xf32>
    %103 = arith.addf %100, %102 : vector<8x128xf32>
    %c0_38 = arith.constant 0 : index
    %c0_39 = arith.constant 0 : index
    %104 = vector.load %arg10[%c0_38, %c0_39] : memref<8x128xf32, #tpu.memory_space<vmem>>, vector<8x128xf32>
    tpu.vector_store %arg10[%c0_38, %c0_39], %103 {strides = array<i32>} : memref<8x128xf32, #tpu.memory_space<vmem>>, vector<8x128xf32>,
    return
  }
  func.func @transform_0(%arg0: i32) -> (i32, i32, i32) {
    %c0_i32 = arith.constant 0 : i32
    %c0_i32_0 = arith.constant 0 : i32
    %c0_i32_1 = arith.constant 0 : i32
    return %c0_i32, %arg0, %c0_i32_0 : i32, i32, i32
  }
  func.func @transform_1(%arg0: i32) -> (i32, i32) {
    %c0_i32 = arith.constant 0 : i32
    %c0_i32_0 = arith.constant 0 : i32
    %c0_i32_1 = arith.constant 0 : i32
    return %c0_i32, %c0_i32_0 : i32, i32
  }
  func.func @transform_2(%arg0: i32) -> (i32, i32) {
    %c0_i32 = arith.constant 0 : i32
    %c0_i32_0 = arith.constant 0 : i32
    %c0_i32_1 = arith.constant 0 : i32
    return %c0_i32, %c0_i32_0 : i32, i32
  }
  func.func @transform_3(%arg0: i32) -> (i32, i32) {
    %c0_i32 = arith.constant 0 : i32
    %c0_i32_0 = arith.constant 0 : i32
    %c0_i32_1 = arith.constant 0 : i32
    return %c0_i32, %c0_i32_0 : i32, i32
  }
  func.func @transform_4(%arg0: i32) -> (i32, i32) {
    %c0_i32 = arith.constant 0 : i32
    %c0_i32_0 = arith.constant 0 : i32
    %c0_i32_1 = arith.constant 0 : i32
    return %c0_i32, %c0_i32_0 : i32, i32
  }
  func.func @transform_5(%arg0: i32) -> (i32, i32) {
    %c0_i32 = arith.constant 0 : i32
    %c0_i32_0 = arith.constant 0 : i32
    %c0_i32_1 = arith.constant 0 : i32
    return %c0_i32, %c0_i32_0 : i32, i32
  }
  func.func @transform_6(%arg0: i32) -> (i32, i32) {
    %c0_i32 = arith.constant 0 : i32
    %c0_i32_0 = arith.constant 0 : i32
    %c0_i32_1 = arith.constant 0 : i32
    return %c0_i32, %c0_i32_0 : i32, i32
  }
  func.func @transform_7(%arg0: i32) -> (i32, i32) {
    %c0_i32 = arith.constant 0 : i32
    %c0_i32_0 = arith.constant 0 : i32
    %c0_i32_1 = arith.constant 0 : i32
    return %c0_i32, %c0_i32_0 : i32, i32
  }
  func.func @transform_8(%arg0: i32) -> (i32, i32) {
    %c0_i32 = arith.constant 0 : i32
    %c0_i32_0 = arith.constant 0 : i32
    %c0_i32_1 = arith.constant 0 : i32
    return %c0_i32, %c0_i32_0 : i32, i32
  }
  func.func @transform_9(%arg0: i32) -> (i32, i32) {
    %c0_i32 = arith.constant 0 : i32
    %c0_i32_0 = arith.constant 0 : i32
    return %arg0, %c0_i32 : i32, i32
  }
}

</mosaic_0001>

<bundles_post_ra>
// kernel: tpu_custom_call.1
= control target key start
LH: loop header
LB: loop body
LE: loop exit
PB: predicated region body
PF: predicated region fallthrough
CT: control target
= control target key end

     0   :  { %14 = vsyncpa [#allocation3], 0  ;;  %s1383_s0 = inlined_call_operand.hbm [shape: f32[8,8,128], index: 0, kind: input, shape index: {}]   ;;  %s1384_s1 = inlined_call_operand.hbm [shape: f32[128,128], index: 1, kind: input, shape index: {}]   ;;  %s1385_s2 = inlined_call_operand.hbm [shape: f32[128,128], index: 2, kind: input, shape index: {}]   ;;  %s1386_s3 = inlined_call_operand.vmem [shape: f32[1,128], index: 3, kind: input, shape index: {}]   ;;  %s1387_s4 = inlined_call_operand.hbm [shape: f32[128,128], index: 4, kind: input, shape index: {}]   ;;  %s1388_s5 = inlined_call_operand.hbm [shape: f32[128,128], index: 5, kind: input, shape index: {}]   ;;  %s1389_s6 = inlined_call_operand.vmem [shape: f32[1,128], index: 6, kind: input, shape index: {}]   ;;  %s1390_s7 = inlined_call_operand.hbm [shape: f32[128,128], index: 7, kind: input, shape index: {}]   ;;  %s1391_s8 = inlined_call_operand.vmem [shape: f32[1,128], index: 8, kind: input, shape index: {}]   ;;  %s1392_s9 = inlined_call_operand.hbm [shape: f32[8,128], index: 9, kind: output, shape index: {}]  }
   0x1   :  { %15 = vsyncpa [#allocation6], 0 }
   0x2   :  { %16 = vsyncpa [#allocation9], 0 }
   0x3   :  { %17 = vsyncpa [#allocation12], 0 }
   0x4   :  { %18 = vsyncpa [#allocation4], 0  ;;  %s36_s11 = sshll.u32 %s1384_s1, 4  ;;  %s925_s12 = smov [#allocation5]   ;;  %s37_s11 = int_to_ptr.hbm [resolvable:$true] %s36_s11 }
   0x5   :  { %s38_s13 = sshll.u32 %s925_s12, 4  ;;  %s64_s16 = sshll.u32 %s1387_s4, 4  ;;  %s39_s13 = int_to_ptr.vmem [resolvable:$true] %s38_s13  ;;  %s65_s16 = int_to_ptr.hbm [resolvable:$true] %s64_s16 }
   0x6   :  { %s926_s17 = smov 128   ;;  %s927_s18 = smov 8  }
   0x7   :  { %44 = dma.hbm_to_vmem [thread:$0]  %s37_s11, 2048, %s39_s13, [#allocation6], %s926_s17, %s926_s17, %s927_s18  }
   0x8   :  { %s928_s19 = smov [#allocation8]   ;;  %s23_s1 = sshll.u32 %s1383_s0, 4  ;;  %s24_s1 = int_to_ptr.hbm [resolvable:$true] %s23_s1 }
   0x9   :  { %s66_s20 = sshll.u32 %s928_s19, 4  ;;  %s49_s24 = sshll.u32 %s1385_s2, 4  ;;  %s67_s20 = int_to_ptr.vmem [resolvable:$true] %s66_s20  ;;  %s50_s24 = int_to_ptr.hbm [resolvable:$true] %s49_s24 }
   0xa   :  { %72 = dma.hbm_to_vmem [thread:$0]  %s65_s16, 2048, %s67_s20, [#allocation9], %s926_s17, %s926_s17, %s927_s18  }
   0xb   :  { %s929_s25 = smov [#allocation2]   ;;  %s930_s27 = smov [#allocation7]  }
   0xc   :  { %s25_s26 = sshll.u32 %s929_s25, 4  ;;  %s51_s0 = sshll.u32 %s930_s27, 4  ;;  %s26_s26 = int_to_ptr.vmem [resolvable:$true] %s25_s26  ;;  %s52_s0 = int_to_ptr.vmem [resolvable:$true] %s51_s0 }
   0xd   :  { %31 = dma.hbm_to_vmem [thread:$0]  %s24_s1, 1024, %s26_s26, [#allocation3], %s926_s17, %s926_s17, %s927_s18  }
   0xe   :  { %s77_s30 = sshll.u32 %s1388_s5, 4  ;;  %s92_s11 = sshll.u32 %s1390_s7, 4  ;;  %s78_s30 = int_to_ptr.hbm [resolvable:$true] %s77_s30  ;;  %s93_s11 = int_to_ptr.hbm [resolvable:$true] %s92_s11 }
   0xf   :  { %57 = dma.hbm_to_vmem [thread:$0]  %s50_s24, 2048, %s52_s0, [#allocation6], %s926_s17, %s926_s17, %s927_s18  }
  0x10   :  { %s931_s12 = smov [#allocation10]   ;;  %s932_s14 = smov [#allocation11]  }
  0x11   :  { %s79_s13 = sshll.u32 %s931_s12, 4  ;;  %s94_s5 = sshll.u32 %s932_s14, 4  ;;  %s80_s13 = int_to_ptr.vmem [resolvable:$true] %s79_s13  ;;  %s95_s5 = int_to_ptr.vmem [resolvable:$true] %s94_s5 }
  0x12   :  { %85 = dma.hbm_to_vmem [thread:$0]  %s78_s30, 2048, %s80_s13, [#allocation9], %s926_s17, %s926_s17, %s927_s18  }
  0x13   :  { %100 = dma.hbm_to_vmem [thread:$0]  %s93_s11, 2048, %s95_s5, [#allocation12], %s926_s17, %s926_s17, %s927_s18  }
  0x14   :  { %915 = dma.done.wait [#allocation3], 1024  }
  0x15   :  { %916 = vsyncadd [#allocation3], 4294966272 }
  0x16   :  { %917 = dma.done.wait [#allocation6], 4096  }
  0x17   :  { %918 = vsyncadd [#allocation6], 4294963200 }
  0x18   :  { %919 = dma.done.wait [#allocation9], 4096  }
  0x19   :  { %920 = vsyncadd [#allocation9], 4294963200 }
  0x1a   :  { %921 = dma.done.wait [#allocation12], 2048  }
  0x1b   :  { %922 = vsyncadd [#allocation12], 4294965248  ;;  %v150_v0 = vld [vmem:[#allocation5 + $0x78] sm:$0xff]  ;;  %v149_v1 = vld [vmem:[#allocation5 + $0x70] sm:$0xff]  ;;  %v933_v33 = vmov 0.0   ;;  %s934_s18 = smov [#allocation13]  }
  0x1c   :  { %v1021_v2 = vld [vmem:[#allocation7 + $0x78] sm:$0xff]  ;;  %171 = vmatpush.msra.mxu0 %v150_v0  ;;  %v1024_v3 = vld [vmem:[#allocation7 + $0x70] sm:$0xff]  ;;  %v148_v4 = vld [vmem:[#allocation5 + $0x68] sm:$0xff]  ;;  %s687_s19 = sshll.u32 %s934_s18, 4  ;;  %s689_s22 = sshll.u32 %s1392_s9, 4  ;;  %s688_s19 = int_to_ptr.vmem [resolvable:$true] %s687_s19  ;;  %s690_s22 = int_to_ptr.hbm [resolvable:$true] %s689_s22 }
  0x1d   :  { %212 = vmatpush.msra.mxu1 %v1021_v2  ;;  %v1026_v5 = vld [vmem:[#allocation7 + $0x68] sm:$0xff]  ;;  %234 = vmatpush.msra.mxu2 %v1021_v2  ;;  %v147_v6 = vld [vmem:[#allocation5 + $0x60] sm:$0xff]  ;;  %v146_v8 = vld [vmem:[#allocation5 + $0x58] sm:$0xff] }
  0x1e   :  { %256 = vmatpush.msra.mxu3 %v1021_v2  ;;  %172 = vmatpush.msra.mxu0 %v149_v1  ;;  %v1031_v7 = vld [vmem:[#allocation7 + $0x60] sm:$0xff]  ;;  %v1036_v9 = vld [vmem:[#allocation7 + $0x58] sm:$0xff]  ;;  %v145_v10 = vld [vmem:[#allocation5 + $0x50] sm:$0xff] }
  0x1f   :  { %213 = vmatpush.msra.mxu1 %v1024_v3  ;;  %235 = vmatpush.msra.mxu2 %v1024_v3  ;;  %v1041_v11 = vld [vmem:[#allocation7 + $0x50] sm:$0xff]  ;;  %v144_v12 = vld [vmem:[#allocation5 + $0x48] sm:$0xff]  ;;  %v143_v14 = vld [vmem:[#allocation5 + $0x40] sm:$0xff] }
  0x20   :  { %257 = vmatpush.msra.mxu3 %v1024_v3  ;;  %173 = vmatpush.msra.mxu0 %v148_v4  ;;  %v1046_v13 = vld [vmem:[#allocation7 + $0x48] sm:$0xff]  ;;  %v1051_v15 = vld [vmem:[#allocation7 + $0x40] sm:$0xff]  ;;  %v142_v16 = vld [vmem:[#allocation5 + $0x38] sm:$0xff] }
  0x21   :  { %214 = vmatpush.msra.mxu1 %v1026_v5  ;;  %236 = vmatpush.msra.mxu2 %v1026_v5  ;;  %v1056_v17 = vld [vmem:[#allocation7 + $0x38] sm:$0xff]  ;;  %v141_v18 = vld [vmem:[#allocation5 + $0x30] sm:$0xff]  ;;  %v140_v20 = vld [vmem:[#allocation5 + $0x28] sm:$0xff] }
  0x22   :  { %258 = vmatpush.msra.mxu3 %v1026_v5  ;;  %174 = vmatpush.msra.mxu0 %v147_v6  ;;  %v1061_v19 = vld [vmem:[#allocation7 + $0x30] sm:$0xff]  ;;  %v1066_v21 = vld [vmem:[#allocation7 + $0x28] sm:$0xff]  ;;  %v139_v22 = vld [vmem:[#allocation5 + $0x20] sm:$0xff] }
  0x23   :  { %215 = vmatpush.msra.mxu1 %v1031_v7  ;;  %237 = vmatpush.msra.mxu2 %v1031_v7  ;;  %v1071_v23 = vld [vmem:[#allocation7 + $0x20] sm:$0xff]  ;;  %v138_v24 = vld [vmem:[#allocation5 + $0x18] sm:$0xff]  ;;  %v137_v26 = vld [vmem:[#allocation5 + $0x10] sm:$0xff] }
  0x24   :  { %259 = vmatpush.msra.mxu3 %v1031_v7  ;;  %175 = vmatpush.msra.mxu0 %v146_v8  ;;  %v1076_v25 = vld [vmem:[#allocation7 + $0x18] sm:$0xff]  ;;  %v1081_v27 = vld [vmem:[#allocation7 + $0x10] sm:$0xff]  ;;  %v136_v28 = vld [vmem:[#allocation5 + $0x8] sm:$0xff] }
  0x25   :  { %216 = vmatpush.msra.mxu1 %v1036_v9  ;;  %238 = vmatpush.msra.mxu2 %v1036_v9  ;;  %v1086_v29 = vld [vmem:[#allocation7 + $0x8] sm:$0xff]  ;;  %v135_v30 = vld [vmem:[#allocation5] sm:$0xff]  ;;  %v129_v41 = vld [vmem:[#allocation2 + $0x10] sm:$0xff] }
  0x26   :  { %260 = vmatpush.msra.mxu3 %v1036_v9  ;;  %176 = vmatpush.msra.mxu0 %v145_v10  ;;  %v1091_v31 = vld [vmem:[#allocation7] sm:$0xff]  ;;  %v128_v34 = vld [vmem:[#allocation2 + $0x8] sm:$0xff]  ;;  %v130_v47 = vld [vmem:[#allocation2 + $0x18] sm:$0xff] }
  0x27   :  { %217 = vmatpush.msra.mxu1 %v1041_v11  ;;  %239 = vmatpush.msra.mxu2 %v1041_v11  ;;  %v127_v32 = vld [vmem:[#allocation2] sm:$0xff]  ;;  %v403_v48 = vld [vmem:[#allocation8 + $0x78] sm:$0xff]  ;;  %v402_v49 = vld [vmem:[#allocation8 + $0x70] sm:$0xff] }
  0x28   :  { %261 = vmatpush.msra.mxu3 %v1041_v11  ;;  %177 = vmatpush.msra.mxu0 %v144_v12  ;;  %v1185_v35 = vld [vmem:[%s1386_s3] ss:$0 sm:$0xff]  ;;  %v401_v50 = vld [vmem:[#allocation8 + $0x68] sm:$0xff]  ;;  %v399_v52 = vld [vmem:[#allocation8 + $0x58] sm:$0xff] }
  0x29   :  { %218 = vmatpush.msra.mxu1 %v1046_v13  ;;  %240 = vmatpush.msra.mxu2 %v1046_v13  ;;  %v400_v51 = vld [vmem:[#allocation8 + $0x60] sm:$0xff]  ;;  %v398_v53 = vld [vmem:[#allocation8 + $0x50] sm:$0xff]  ;;  %v397_v59 = vld [vmem:[#allocation8 + $0x48] sm:$0xff] }
  0x2a   :  { %262 = vmatpush.msra.mxu3 %v1046_v13  ;;  %178 = vmatpush.msra.mxu0 %v143_v14  ;;  %v396_v60 = vld [vmem:[#allocation8 + $0x40] sm:$0xff]  ;;  %v395_v61 = vld [vmem:[#allocation8 + $0x38] sm:$0xff]  ;;  %v394_v62 = vld [vmem:[#allocation8 + $0x30] sm:$0xff] }
  0x2b   :  { %219 = vmatpush.msra.mxu1 %v1051_v15  ;;  %241 = vmatpush.msra.mxu2 %v1051_v15  ;;  %v393_v63 = vld [vmem:[#allocation8 + $0x28] sm:$0xff]  ;;  %v392_v0 = vld [vmem:[#allocation8 + $0x20] sm:$0xff]  ;;  %v391_v1 = vld [vmem:[#allocation8 + $0x18] sm:$0xff] }
  0x2c   :  { %263 = vmatpush.msra.mxu3 %v1051_v15  ;;  %179 = vmatpush.msra.mxu0 %v142_v16  ;;  %v389_v4 = vld [vmem:[#allocation8 + $0x8] sm:$0xff]  ;;  %v1199_v12 = vld [vmem:[#allocation10 + $0x70] sm:$0xff]  ;;  %v1209_v14 = vld [vmem:[#allocation10 + $0x60] sm:$0xff] }
  0x2d   :  { %220 = vmatpush.msra.mxu1 %v1056_v17  ;;  %242 = vmatpush.msra.mxu2 %v1056_v17  ;;  %v1222_v16 = vld [vmem:[#allocation10 + $0x50] sm:$0xff] }
  0x2e   :  { %264 = vmatpush.msra.mxu3 %v1056_v17  ;;  %180 = vmatpush.msra.mxu0 %v141_v18  ;;  %v1241_v18 = vld [vmem:[#allocation10 + $0x40] sm:$0xff] }
  0x2f   :  { %221 = vmatpush.msra.mxu1 %v1061_v19  ;;  %243 = vmatpush.msra.mxu2 %v1061_v19 }
  0x30   :  { %265 = vmatpush.msra.mxu3 %v1061_v19  ;;  %181 = vmatpush.msra.mxu0 %v140_v20  ;;  %v1250_v20 = vld [vmem:[#allocation10 + $0x30] sm:$0xff] }
  0x31   :  { %222 = vmatpush.msra.mxu1 %v1066_v21  ;;  %244 = vmatpush.msra.mxu2 %v1066_v21 }
  0x32   :  { %266 = vmatpush.msra.mxu3 %v1066_v21  ;;  %182 = vmatpush.msra.mxu0 %v139_v22  ;;  %v1263_v22 = vld [vmem:[#allocation10 + $0x20] sm:$0xff] }
  0x33   :  { %223 = vmatpush.msra.mxu1 %v1071_v23  ;;  %245 = vmatpush.msra.mxu2 %v1071_v23 }
  0x34   :  { %267 = vmatpush.msra.mxu3 %v1071_v23  ;;  %183 = vmatpush.msra.mxu0 %v138_v24  ;;  %v1271_v24 = vld [vmem:[#allocation10 + $0x10] sm:$0xff] }
  0x35   :  { %224 = vmatpush.msra.mxu1 %v1076_v25  ;;  %246 = vmatpush.msra.mxu2 %v1076_v25 }
  0x36   :  { %268 = vmatpush.msra.mxu3 %v1076_v25  ;;  %184 = vmatpush.msra.mxu0 %v137_v26  ;;  %v1276_v26 = vld [vmem:[#allocation10 + $0x8] sm:$0xff] }
  0x37   :  { %225 = vmatpush.msra.mxu1 %v1081_v27  ;;  %247 = vmatpush.msra.mxu2 %v1081_v27 }
  0x38   :  { %269 = vmatpush.msra.mxu3 %v1081_v27  ;;  %185 = vmatpush.msra.mxu0 %v136_v28 }
  0x39   :  { %226 = vmatpush.msra.mxu1 %v1086_v29  ;;  %248 = vmatpush.msra.mxu2 %v1086_v29 }
  0x3a   :  { %270 = vmatpush.msra.mxu3 %v1086_v29  ;;  %186 = vmatpush.msra.mxu0 %v135_v30 }
  0x3b   :  { %227 = vmatpush.msra.mxu1 %v1091_v31  ;;  %187 = vmatmul.f32.vlgmr.msra.gmra.mxu0 %v127_v32  ;;  %v133_v32 = vld [vmem:[#allocation2 + $0x30] sm:$0xff] }
  0x3c   :  { %228 = vmatmul.f32.vlgmr.msra.gmra.mxu1 %v933_v33  ;;  %249 = vmatpush.msra.mxu2 %v1091_v31 }
  0x3d   :  { %271 = vmatpush.msra.mxu3 %v1091_v31  ;;  %278 = vmatpush.msrb.mxu1 %v1021_v2 }
  0x3e   :  { %300 = vmatpush.msrb.mxu2 %v1021_v2  ;;  %344 = vmatpush.msrb.mxu0 %v1021_v2 }
  0x3f   :  { %322 = vmatpush.msrb.mxu3 %v1021_v2  ;;  %279 = vmatpush.msrb.mxu1 %v1024_v3 }
  0x40   :  { %301 = vmatpush.msrb.mxu2 %v1024_v3  ;;  %345 = vmatpush.msrb.mxu0 %v1024_v3 }
  0x41   :  { %323 = vmatpush.msrb.mxu3 %v1024_v3  ;;  %280 = vmatpush.msrb.mxu1 %v1026_v5 }
  0x42   :  { %302 = vmatpush.msrb.mxu2 %v1026_v5  ;;  %346 = vmatpush.msrb.mxu0 %v1026_v5 }
  0x43   :  { %324 = vmatpush.msrb.mxu3 %v1026_v5  ;;  %281 = vmatpush.msrb.mxu1 %v1031_v7 }
  0x44   :  { %303 = vmatpush.msrb.mxu2 %v1031_v7  ;;  %347 = vmatpush.msrb.mxu0 %v1031_v7 }
  0x45   :  { %325 = vmatpush.msrb.mxu3 %v1031_v7  ;;  %282 = vmatpush.msrb.mxu1 %v1036_v9 }
  0x46   :  { %304 = vmatpush.msrb.mxu2 %v1036_v9  ;;  %348 = vmatpush.msrb.mxu0 %v1036_v9 }
  0x47   :  { %326 = vmatpush.msrb.mxu3 %v1036_v9  ;;  %283 = vmatpush.msrb.mxu1 %v1041_v11 }
  0x48   :  { %305 = vmatpush.msrb.mxu2 %v1041_v11  ;;  %349 = vmatpush.msrb.mxu0 %v1041_v11 }
  0x49   :  { %327 = vmatpush.msrb.mxu3 %v1041_v11  ;;  %284 = vmatpush.msrb.mxu1 %v1046_v13 }
  0x4a   :  { %306 = vmatpush.msrb.mxu2 %v1046_v13  ;;  %350 = vmatpush.msrb.mxu0 %v1046_v13 }
  0x4b   :  { %328 = vmatpush.msrb.mxu3 %v1046_v13  ;;  %285 = vmatpush.msrb.mxu1 %v1051_v15 }
  0x4c   :  { %307 = vmatpush.msrb.mxu2 %v1051_v15  ;;  %351 = vmatpush.msrb.mxu0 %v1051_v15 }
  0x4d   :  { %329 = vmatpush.msrb.mxu3 %v1051_v15  ;;  %286 = vmatpush.msrb.mxu1 %v1056_v17 }
  0x4e   :  { %308 = vmatpush.msrb.mxu2 %v1056_v17  ;;  %352 = vmatpush.msrb.mxu0 %v1056_v17 }
  0x4f   :  { %330 = vmatpush.msrb.mxu3 %v1056_v17  ;;  %287 = vmatpush.msrb.mxu1 %v1061_v19 }
  0x50   :  { %309 = vmatpush.msrb.mxu2 %v1061_v19  ;;  %353 = vmatpush.msrb.mxu0 %v1061_v19 }
  0x51   :  { %331 = vmatpush.msrb.mxu3 %v1061_v19  ;;  %288 = vmatpush.msrb.mxu1 %v1066_v21 }
  0x52   :  { %310 = vmatpush.msrb.mxu2 %v1066_v21  ;;  %354 = vmatpush.msrb.mxu0 %v1066_v21 }
  0x53   :  { %332 = vmatpush.msrb.mxu3 %v1066_v21  ;;  %289 = vmatpush.msrb.mxu1 %v1071_v23 }
  0x54   :  { %311 = vmatpush.msrb.mxu2 %v1071_v23  ;;  %355 = vmatpush.msrb.mxu0 %v1071_v23 }
  0x55   :  { %333 = vmatpush.msrb.mxu3 %v1071_v23  ;;  %290 = vmatpush.msrb.mxu1 %v1076_v25 }
  0x56   :  { %312 = vmatpush.msrb.mxu2 %v1076_v25  ;;  %356 = vmatpush.msrb.mxu0 %v1076_v25 }
  0x57   :  { %334 = vmatpush.msrb.mxu3 %v1076_v25  ;;  %291 = vmatpush.msrb.mxu1 %v1081_v27 }
  0x58   :  { %313 = vmatpush.msrb.mxu2 %v1081_v27  ;;  %357 = vmatpush.msrb.mxu0 %v1081_v27 }
  0x59   :  { %335 = vmatpush.msrb.mxu3 %v1081_v27  ;;  %292 = vmatpush.msrb.mxu1 %v1086_v29 }
  0x5a   :  { %314 = vmatpush.msrb.mxu2 %v1086_v29  ;;  %358 = vmatpush.msrb.mxu0 %v1086_v29 }
  0x5b   :  { %336 = vmatpush.msrb.mxu3 %v1086_v29  ;;  %293 = vmatpush.msrb.mxu1 %v1091_v31 }
  0x5c   :  { %315 = vmatpush.msrb.mxu2 %v1091_v31  ;;  %359 = vmatpush.msrb.mxu0 %v1091_v31 }
  0x5d   :  { %337 = vmatpush.msrb.mxu3 %v1091_v31  ;;  %366 = vmatpush.msra.mxu1 %v1021_v2  ;;  %v390_v2 = vld [vmem:[#allocation8 + $0x10] sm:$0xff] }
  0x5e   :  { %190 = vmatmul.f32.gmra.mxu0 %v128_v34 }
  0x5f   :  { %367 = vmatpush.msra.mxu1 %v1024_v3  ;;  %v131_v3 = vld [vmem:[#allocation2 + $0x20] sm:$0xff] }
  0x61   :  { %368 = vmatpush.msra.mxu1 %v1026_v5  ;;  %v388_v5 = vld [vmem:[#allocation8] sm:$0xff] }
  0x63   :  { %369 = vmatpush.msra.mxu1 %v1031_v7 }
  0x65   :  { %370 = vmatpush.msra.mxu1 %v1036_v9 }
  0x66   :  { %193 = vmatmul.f32.gmra.mxu0 %v129_v41 }
  0x67   :  { %371 = vmatpush.msra.mxu1 %v1041_v11  ;;  %v1197_v11 = vld [vmem:[#allocation10 + $0x78] sm:$0xff] }
  0x68   :  { %487 = vmatpush.msra.mxu0 %v1197_v11 }
  0x69   :  { %372 = vmatpush.msra.mxu1 %v1046_v13  ;;  %v1203_v13 = vld [vmem:[#allocation10 + $0x68] sm:$0xff] }
  0x6a   :  { %488 = vmatpush.msra.mxu0 %v1199_v12 }
  0x6b   :  { %373 = vmatpush.msra.mxu1 %v1051_v15  ;;  %v1215_v15 = vld [vmem:[#allocation10 + $0x58] sm:$0xff] }
  0x6c   :  { %489 = vmatpush.msra.mxu0 %v1203_v13 }
  0x6d   :  { %374 = vmatpush.msra.mxu1 %v1056_v17  ;;  %v1235_v17 = vld [vmem:[#allocation10 + $0x48] sm:$0xff] }
  0x6e   :  { %196 = vmatmul.f32.gmra.mxu0 %v130_v47 }
  0x6f   :  { %375 = vmatpush.msra.mxu1 %v1061_v19  ;;  %490 = vmatpush.msra.mxu0 %v1209_v14  ;;  %v1245_v19 = vld [vmem:[#allocation10 + $0x38] sm:$0xff] }
  0x71   :  { %376 = vmatpush.msra.mxu1 %v1066_v21  ;;  %491 = vmatpush.msra.mxu0 %v1215_v15  ;;  %v1253_v21 = vld [vmem:[#allocation10 + $0x28] sm:$0xff] }
  0x73   :  { %377 = vmatpush.msra.mxu1 %v1071_v23  ;;  %492 = vmatpush.msra.mxu0 %v1222_v16  ;;  %v1269_v23 = vld [vmem:[#allocation10 + $0x18] sm:$0xff] }
  0x75   :  { %378 = vmatpush.msra.mxu1 %v1076_v25  ;;  %493 = vmatpush.msra.mxu0 %v1235_v17  ;;  %v132_v25 = vld [vmem:[#allocation2 + $0x28] sm:$0xff] }
  0x76   :  { %199 = vmatmul.f32.gmra.mxu0 %v131_v3 }
  0x77   :  { %379 = vmatpush.msra.mxu1 %v1081_v27  ;;  %494 = vmatpush.msra.mxu0 %v1241_v18  ;;  %v1286_v27 = vld [vmem:[#allocation10] sm:$0xff] }
  0x79   :  { %380 = vmatpush.msra.mxu1 %v1086_v29  ;;  %495 = vmatpush.msra.mxu0 %v1245_v19 }
  0x7b   :  { %381 = vmatpush.msra.mxu1 %v1091_v31  ;;  %496 = vmatpush.msra.mxu0 %v1250_v20 }
  0x7d   :  { %497 = vmatpush.msra.mxu0 %v1253_v21 }
  0x7e   :  { %202 = vmatmul.f32.gmra.mxu0 %v132_v25  ;;  %v649_v25 = vld [vmem:[#allocation11 + $0x40] sm:$0xff] }
  0x7f   :  { %498 = vmatpush.msra.mxu0 %v1263_v22 }
  0x81   :  { %499 = vmatpush.msra.mxu0 %v1269_v23 }
  0x83   :  { %500 = vmatpush.msra.mxu0 %v1271_v24 }
  0x85   :  { %501 = vmatpush.msra.mxu0 %v1276_v26 }
  0x86   :  { %205 = vmatmul.f32.gmra.mxu0 %v133_v32 }
  0x87   :  { %502 = vmatpush.msra.mxu0 %v1286_v27 }
  0xb8   :  { %v188_v36 = vpop.f32.mrf.mxu0 }
  0xb9   :  { %v229_v37 = vpop.f32.mrf.mxu1  ;;  %v189_v38 = vadd.f32 %v1185_v35, %v188_v36 }
  0xbb   :  { %v232_v39 = vadd.f32 %v229_v37, %v189_v38 }
  0xbd   :  { %715 = vtanh.f32 %v232_v39 }
  0xc3   :  { %v1188_v40 = vpop.eup %715 }
  0xc4   :  { %250 = vmatmul.f32.vlgmr.msra.gmra.mxu2 %v1188_v40 }
  0xc5   :  { %424 = vmatpush.msra.mxu2 %v403_v48 }
  0xc7   :  { %425 = vmatpush.msra.mxu2 %v402_v49 }
  0xc9   :  { %426 = vmatpush.msra.mxu2 %v401_v50 }
  0xcb   :  { %427 = vmatpush.msra.mxu2 %v400_v51 }
  0xcd   :  { %428 = vmatpush.msra.mxu2 %v399_v52 }
  0xcf   :  { %429 = vmatpush.msra.mxu2 %v398_v53 }
  0xd1   :  { %430 = vmatpush.msra.mxu2 %v397_v59 }
  0xd3   :  { %431 = vmatpush.msra.mxu2 %v396_v60 }
  0xd5   :  { %432 = vmatpush.msra.mxu2 %v395_v61 }
  0xd7   :  { %433 = vmatpush.msra.mxu2 %v394_v62 }
  0xd9   :  { %434 = vmatpush.msra.mxu2 %v393_v63 }
  0xdb   :  { %v191_v42 = vpop.f32.mrf.mxu0  ;;  %435 = vmatpush.msra.mxu2 %v392_v0 }
  0xdc   :  { %v192_v43 = vadd.f32 %v1185_v35, %v191_v42 }
  0xdd   :  { %436 = vmatpush.msra.mxu2 %v391_v1 }
  0xdf   :  { %437 = vmatpush.msra.mxu2 %v390_v2 }
  0xe1   :  { %438 = vmatpush.msra.mxu2 %v389_v4 }
  0xe3   :  { %v194_v54 = vpop.f32.mrf.mxu0  ;;  %439 = vmatpush.msra.mxu2 %v388_v5 }
  0xe4   :  { %v195_v55 = vadd.f32 %v1185_v35, %v194_v54 }
  0xeb   :  { %v197_v6 = vpop.f32.mrf.mxu0 }
  0xec   :  { %v198_v7 = vadd.f32 %v1185_v35, %v197_v6 }
  0xf3   :  { %v200_v28 = vpop.f32.mrf.mxu0 }
  0xf4   :  { %v201_v29 = vadd.f32 %v1185_v35, %v200_v28  ;;  %v647_v28 = vld [vmem:[#allocation11 + $0x30] sm:$0xff] }
  0xfb   :  { %v203_v36 = vpop.f32.mrf.mxu0 }
  0xfc   :  { %v204_v37 = vadd.f32 %v1185_v35, %v203_v36  ;;  %v644_v36 = vld [vmem:[#allocation11 + $0x18] sm:$0xff] }
 0x103   :  { %v206_v47 = vpop.f32.mrf.mxu0 }
 0x104   :  { %v207_v49 = vadd.f32 %v1185_v35, %v206_v47 }
 0x147   :  { %v251_v44 = vpop.f32.mrf.mxu2 }
 0x148   :  { %v254_v45 = vadd.f32 %v251_v44, %v192_v43 }
 0x14a   :  { %717 = vtanh.f32 %v254_v45 }
 0x150   :  { %v1192_v46 = vpop.eup %717 }
 0x151   :  { %272 = vmatmul.f32.vlgmr.msra.gmra.mxu3 %v1192_v46 }
 0x152   :  { %465 = vmatpush.msra.mxu3 %v1197_v11 }
 0x154   :  { %466 = vmatpush.msra.mxu3 %v1199_v12 }
 0x156   :  { %467 = vmatpush.msra.mxu3 %v1203_v13 }
 0x158   :  { %468 = vmatpush.msra.mxu3 %v1209_v14 }
 0x15a   :  { %469 = vmatpush.msra.mxu3 %v1215_v15 }
 0x15c   :  { %470 = vmatpush.msra.mxu3 %v1222_v16 }
 0x15e   :  { %471 = vmatpush.msra.mxu3 %v1235_v17 }
 0x160   :  { %472 = vmatpush.msra.mxu3 %v1241_v18 }
 0x162   :  { %473 = vmatpush.msra.mxu3 %v1245_v19 }
 0x164   :  { %474 = vmatpush.msra.mxu3 %v1250_v20 }
 0x166   :  { %475 = vmatpush.msra.mxu3 %v1253_v21 }
 0x168   :  { %476 = vmatpush.msra.mxu3 %v1263_v22 }
 0x16a   :  { %477 = vmatpush.msra.mxu3 %v1269_v23 }
 0x16c   :  { %478 = vmatpush.msra.mxu3 %v1271_v24 }
 0x16e   :  { %479 = vmatpush.msra.mxu3 %v1276_v26 }
 0x170   :  { %480 = vmatpush.msra.mxu3 %v1286_v27 }
 0x1d4   :  { %v273_v56 = vpop.f32.mrf.mxu3 }
 0x1d5   :  { %v276_v57 = vadd.f32 %v273_v56, %v195_v55 }
 0x1d7   :  { %719 = vtanh.f32 %v276_v57 }
 0x1dd   :  { %v720_v58 = vpop.eup %719 }
 0x1de   :  { %294 = vmatmul.f32.vlgmr.msrb.gmra.mxu1 %v720_v58 }
 0x1df   :  { %509 = vmatpush.msrb.mxu1 %v1197_v11 }
 0x1e1   :  { %510 = vmatpush.msrb.mxu1 %v1199_v12 }
 0x1e3   :  { %511 = vmatpush.msrb.mxu1 %v1203_v13 }
 0x1e5   :  { %512 = vmatpush.msrb.mxu1 %v1209_v14 }
 0x1e7   :  { %513 = vmatpush.msrb.mxu1 %v1215_v15 }
 0x1e9   :  { %514 = vmatpush.msrb.mxu1 %v1222_v16 }
 0x1eb   :  { %515 = vmatpush.msrb.mxu1 %v1235_v17 }
 0x1ed   :  { %516 = vmatpush.msrb.mxu1 %v1241_v18 }
 0x1ef   :  { %517 = vmatpush.msrb.mxu1 %v1245_v19 }
 0x1f1   :  { %518 = vmatpush.msrb.mxu1 %v1250_v20 }
 0x1f3   :  { %519 = vmatpush.msrb.mxu1 %v1253_v21 }
 0x1f5   :  { %520 = vmatpush.msrb.mxu1 %v1263_v22 }
 0x1f7   :  { %521 = vmatpush.msrb.mxu1 %v1269_v23 }
 0x1f9   :  { %522 = vmatpush.msrb.mxu1 %v1271_v24 }
 0x1fb   :  { %523 = vmatpush.msrb.mxu1 %v1276_v26 }
 0x1fd   :  { %524 = vmatpush.msrb.mxu1 %v1286_v27 }
 0x25b   :  { %v295_v8 = vpop.f32.mrf.mxu1 }
 0x25c   :  { %v298_v9 = vadd.f32 %v295_v8, %v198_v7 }
 0x25e   :  { %721 = vtanh.f32 %v298_v9 }
 0x264   :  { %v722_v10 = vpop.eup %721 }
 0x265   :  { %316 = vmatmul.f32.vlgmr.msrb.gmra.mxu2 %v722_v10 }
 0x266   :  { %597 = vmatpush.msrb.mxu2 %v1197_v11 }
 0x268   :  { %598 = vmatpush.msrb.mxu2 %v1199_v12 }
 0x26a   :  { %599 = vmatpush.msrb.mxu2 %v1203_v13 }
 0x26c   :  { %600 = vmatpush.msrb.mxu2 %v1209_v14 }
 0x26d   :  { %440 = vmatmul.f32.vlgmr.msra.gmra.mxu2 %v1188_v40  ;;  %v1333_v40 = vld [vmem:[%s1389_s6] ss:$0 sm:$0xff] }
 0x26e   :  { %601 = vmatpush.msrb.mxu2 %v1215_v15 }
 0x270   :  { %602 = vmatpush.msrb.mxu2 %v1222_v16 }
 0x272   :  { %603 = vmatpush.msrb.mxu2 %v1235_v17 }
 0x274   :  { %604 = vmatpush.msrb.mxu2 %v1241_v18 }
 0x275   :  { %443 = vmatmul.f32.gmra.mxu2 %v1192_v46 }
 0x276   :  { %605 = vmatpush.msrb.mxu2 %v1245_v19 }
 0x278   :  { %606 = vmatpush.msrb.mxu2 %v1250_v20 }
 0x27a   :  { %607 = vmatpush.msrb.mxu2 %v1253_v21 }
 0x27c   :  { %608 = vmatpush.msrb.mxu2 %v1263_v22 }
 0x27d   :  { %446 = vmatmul.f32.gmra.mxu2 %v720_v58 }
 0x27e   :  { %609 = vmatpush.msrb.mxu2 %v1269_v23 }
 0x280   :  { %610 = vmatpush.msrb.mxu2 %v1271_v24 }
 0x282   :  { %611 = vmatpush.msrb.mxu2 %v1276_v26 }
 0x284   :  { %612 = vmatpush.msrb.mxu2 %v1286_v27 }
 0x285   :  { %449 = vmatmul.f32.gmra.mxu2 %v722_v10 }
 0x2e8   :  { %v317_v30 = vpop.f32.mrf.mxu2 }
 0x2e9   :  { %v320_v31 = vadd.f32 %v317_v30, %v201_v29  ;;  %v646_v29 = vld [vmem:[#allocation11 + $0x28] sm:$0xff] }
 0x2eb   :  { %723 = vtanh.f32 %v320_v31 }
 0x2f0   :  { %v441_v41 = vpop.f32.mrf.mxu2 }
 0x2f1   :  { %v724_v34 = vpop.eup %723  ;;  %v442_v42 = vadd.f32 %v1333_v40, %v441_v41 }
 0x2f2   :  { %338 = vmatmul.f32.vlgmr.msrb.gmra.mxu3 %v724_v34  ;;  %452 = vmatmul.f32.gmra.mxu2 %v724_v34 }
 0x2f3   :  { %531 = vmatpush.msrb.mxu3 %v1197_v11 }
 0x2f5   :  { %532 = vmatpush.msrb.mxu3 %v1199_v12 }
 0x2f7   :  { %533 = vmatpush.msrb.mxu3 %v1203_v13 }
 0x2f8   :  { %v444_v52 = vpop.f32.mrf.mxu2 }
 0x2f9   :  { %534 = vmatpush.msrb.mxu3 %v1209_v14  ;;  %v445_v53 = vadd.f32 %v1333_v40, %v444_v52 }
 0x2fa   :  { %481 = vmatmul.f32.vlgmr.msra.gmra.mxu3 %v933_v33  ;;  %v134_v33 = vld [vmem:[#allocation2 + $0x38] sm:$0xff] }
 0x2fb   :  { %535 = vmatpush.msrb.mxu3 %v1215_v15  ;;  %208 = vmatmul.f32.gmra.mxu0 %v134_v33  ;;  %v645_v33 = vld [vmem:[#allocation11 + $0x20] sm:$0xff] }
 0x2fd   :  { %536 = vmatpush.msrb.mxu3 %v1222_v16 }
 0x2ff   :  { %537 = vmatpush.msrb.mxu3 %v1235_v17 }
 0x300   :  { %v447_v61 = vpop.f32.mrf.mxu2 }
 0x301   :  { %538 = vmatpush.msrb.mxu3 %v1241_v18  ;;  %v448_v62 = vadd.f32 %v1333_v40, %v447_v61 }
 0x303   :  { %539 = vmatpush.msrb.mxu3 %v1245_v19 }
 0x305   :  { %540 = vmatpush.msrb.mxu3 %v1250_v20 }
 0x307   :  { %541 = vmatpush.msrb.mxu3 %v1253_v21 }
 0x308   :  { %v450_v3 = vpop.f32.mrf.mxu2 }
 0x309   :  { %542 = vmatpush.msrb.mxu3 %v1263_v22  ;;  %v451_v4 = vadd.f32 %v1333_v40, %v450_v3 }
 0x30b   :  { %543 = vmatpush.msrb.mxu3 %v1269_v23 }
 0x30d   :  { %544 = vmatpush.msrb.mxu3 %v1271_v24 }
 0x30f   :  { %545 = vmatpush.msrb.mxu3 %v1276_v26 }
 0x311   :  { %546 = vmatpush.msrb.mxu3 %v1286_v27 }
 0x313   :  { %619 = vmatpush.msra.mxu3 %v1197_v11 }
 0x315   :  { %620 = vmatpush.msra.mxu3 %v1199_v12 }
 0x317   :  { %621 = vmatpush.msra.mxu3 %v1203_v13 }
 0x319   :  { %622 = vmatpush.msra.mxu3 %v1209_v14 }
 0x31b   :  { %623 = vmatpush.msra.mxu3 %v1215_v15 }
 0x31d   :  { %624 = vmatpush.msra.mxu3 %v1222_v16 }
 0x31f   :  { %625 = vmatpush.msra.mxu3 %v1235_v17 }
 0x321   :  { %626 = vmatpush.msra.mxu3 %v1241_v18 }
 0x323   :  { %627 = vmatpush.msra.mxu3 %v1245_v19 }
 0x325   :  { %628 = vmatpush.msra.mxu3 %v1250_v20 }
 0x327   :  { %629 = vmatpush.msra.mxu3 %v1253_v21 }
 0x329   :  { %630 = vmatpush.msra.mxu3 %v1263_v22 }
 0x32b   :  { %631 = vmatpush.msra.mxu3 %v1269_v23 }
 0x32d   :  { %632 = vmatpush.msra.mxu3 %v1271_v24 }
 0x32f   :  { %633 = vmatpush.msra.mxu3 %v1276_v26 }
 0x331   :  { %634 = vmatpush.msra.mxu3 %v1286_v27 }
 0x375   :  { %v339_v38 = vpop.f32.mrf.mxu3  ;;  %v453_v7 = vpop.f32.mrf.mxu2 }
 0x376   :  { %v342_v39 = vadd.f32 %v339_v38, %v204_v37  ;;  %v454_v8 = vadd.f32 %v1333_v40, %v453_v7  ;;  %v643_v37 = vld [vmem:[#allocation11 + $0x10] sm:$0xff]  ;;  %v642_v38 = vld [vmem:[#allocation11 + $0x8] sm:$0xff] }
 0x378   :  { %725 = vtanh.f32 %v342_v39  ;;  %v209_v48 = vpop.f32.mrf.mxu0  ;;  %v641_v39 = vld [vmem:[#allocation11] sm:$0xff] }
 0x379   :  { %v210_v58 = vadd.f32 %v1185_v35, %v209_v48 }
 0x37d   :  { %v482_v43 = vpop.f32.mrf.mxu3 }
 0x37e   :  { %v726_v44 = vpop.eup %725  ;;  %v485_v45 = vadd.f32 %v482_v43, %v442_v42 }
 0x37f   :  { %360 = vmatmul.f32.vlgmr.msrb.gmra.mxu0 %v726_v44  ;;  %455 = vmatmul.f32.gmra.mxu2 %v726_v44 }
 0x380   :  { %727 = vtanh.f32 %v485_v45  ;;  %553 = vmatpush.msrb.mxu0 %v1197_v11  ;;  %v714_v45 = vld [vmem:[%s1391_s8] ss:$0 sm:$0xff] }
 0x382   :  { %554 = vmatpush.msrb.mxu0 %v1199_v12 }
 0x384   :  { %555 = vmatpush.msrb.mxu0 %v1203_v13 }
 0x386   :  { %v728_v46 = vpop.eup %727  ;;  %556 = vmatpush.msrb.mxu0 %v1209_v14 }
 0x387   :  { %503 = vmatmul.f32.vlgmr.msra.gmra.mxu0 %v728_v46 }
 0x388   :  { %557 = vmatpush.msrb.mxu0 %v1215_v15 }
 0x38a   :  { %558 = vmatpush.msrb.mxu0 %v1222_v16 }
 0x38c   :  { %559 = vmatpush.msrb.mxu0 %v1235_v17 }
 0x38e   :  { %560 = vmatpush.msrb.mxu0 %v1241_v18 }
 0x390   :  { %561 = vmatpush.msrb.mxu0 %v1245_v19 }
 0x392   :  { %562 = vmatpush.msrb.mxu0 %v1250_v20 }
 0x394   :  { %563 = vmatpush.msrb.mxu0 %v1253_v21 }
 0x396   :  { %564 = vmatpush.msrb.mxu0 %v1263_v22 }
 0x398   :  { %565 = vmatpush.msrb.mxu0 %v1269_v23 }
 0x39a   :  { %566 = vmatpush.msrb.mxu0 %v1271_v24 }
 0x39c   :  { %567 = vmatpush.msrb.mxu0 %v1276_v26 }
 0x39e   :  { %568 = vmatpush.msrb.mxu0 %v1286_v27 }
 0x3fc   :  { %v361_v50 = vpop.f32.mrf.mxu0 }
 0x3fd   :  { %v364_v51 = vadd.f32 %v361_v50, %v207_v49 }
 0x3ff   :  { %729 = vtanh.f32 %v364_v51 }
 0x404   :  { %v504_v54 = vpop.f32.mrf.mxu0 }
 0x405   :  { %v730_v55 = vpop.eup %729  ;;  %v507_v56 = vadd.f32 %v504_v54, %v445_v53 }
 0x406   :  { %382 = vmatmul.f32.vlgmr.msra.gmra.mxu1 %v730_v55  ;;  %458 = vmatmul.f32.gmra.mxu2 %v730_v55 }
 0x407   :  { %731 = vtanh.f32 %v507_v56  ;;  %575 = vmatpush.msra.mxu1 %v1197_v11 }
 0x409   :  { %576 = vmatpush.msra.mxu1 %v1199_v12  ;;  %v456_v12 = vpop.f32.mrf.mxu2 }
 0x40b   :  { %577 = vmatpush.msra.mxu1 %v1203_v13  ;;  %v457_v13 = vadd.f32 %v1333_v40, %v456_v12 }
 0x40d   :  { %v732_v57 = vpop.eup %731  ;;  %578 = vmatpush.msra.mxu1 %v1209_v14 }
 0x40e   :  { %525 = vmatmul.f32.vlgmr.msrb.gmra.mxu1 %v732_v57 }
 0x40f   :  { %579 = vmatpush.msra.mxu1 %v1215_v15 }
 0x411   :  { %580 = vmatpush.msra.mxu1 %v1222_v16 }
 0x413   :  { %581 = vmatpush.msra.mxu1 %v1235_v17  ;;  %v656_v17 = vld [vmem:[#allocation11 + $0x78] sm:$0xff] }
 0x414   :  { %661 = vmatpush.msra.mxu0 %v656_v17 }
 0x415   :  { %582 = vmatpush.msra.mxu1 %v1241_v18  ;;  %v655_v18 = vld [vmem:[#allocation11 + $0x70] sm:$0xff] }
 0x416   :  { %662 = vmatpush.msra.mxu0 %v655_v18 }
 0x417   :  { %583 = vmatpush.msra.mxu1 %v1245_v19  ;;  %v654_v19 = vld [vmem:[#allocation11 + $0x68] sm:$0xff] }
 0x418   :  { %663 = vmatpush.msra.mxu0 %v654_v19 }
 0x419   :  { %584 = vmatpush.msra.mxu1 %v1250_v20  ;;  %v653_v20 = vld [vmem:[#allocation11 + $0x60] sm:$0xff] }
 0x41a   :  { %664 = vmatpush.msra.mxu0 %v653_v20 }
 0x41b   :  { %585 = vmatpush.msra.mxu1 %v1253_v21 }
 0x41d   :  { %586 = vmatpush.msra.mxu1 %v1263_v22  ;;  %v652_v22 = vld [vmem:[#allocation11 + $0x58] sm:$0xff] }
 0x41e   :  { %665 = vmatpush.msra.mxu0 %v652_v22 }
 0x41f   :  { %587 = vmatpush.msra.mxu1 %v1269_v23  ;;  %v651_v23 = vld [vmem:[#allocation11 + $0x50] sm:$0xff] }
 0x420   :  { %666 = vmatpush.msra.mxu0 %v651_v23 }
 0x421   :  { %588 = vmatpush.msra.mxu1 %v1271_v24  ;;  %v650_v24 = vld [vmem:[#allocation11 + $0x48] sm:$0xff] }
 0x422   :  { %667 = vmatpush.msra.mxu0 %v650_v24 }
 0x423   :  { %589 = vmatpush.msra.mxu1 %v1276_v26 }
 0x424   :  { %668 = vmatpush.msra.mxu0 %v649_v25 }
 0x425   :  { %590 = vmatpush.msra.mxu1 %v1286_v27  ;;  %v648_v27 = vld [vmem:[#allocation11 + $0x38] sm:$0xff] }
 0x426   :  { %669 = vmatpush.msra.mxu0 %v648_v27 }
 0x428   :  { %670 = vmatpush.msra.mxu0 %v647_v28 }
 0x42a   :  { %671 = vmatpush.msra.mxu0 %v646_v29 }
 0x42c   :  { %672 = vmatpush.msra.mxu0 %v645_v33 }
 0x42e   :  { %673 = vmatpush.msra.mxu0 %v644_v36 }
 0x430   :  { %674 = vmatpush.msra.mxu0 %v643_v37 }
 0x432   :  { %675 = vmatpush.msra.mxu0 %v642_v38 }
 0x434   :  { %676 = vmatpush.msra.mxu0 %v641_v39 }
 0x483   :  { %v383_v59 = vpop.f32.mrf.mxu1 }
 0x484   :  { %v386_v60 = vadd.f32 %v383_v59, %v210_v58 }
 0x486   :  { %733 = vtanh.f32 %v386_v60 }
 0x489   :  { %v459_v21 = vpop.f32.mrf.mxu2 }
 0x48a   :  { %v460_v30 = vadd.f32 %v1333_v40, %v459_v21 }
 0x48b   :  { %v526_v63 = vpop.f32.mrf.mxu1 }
 0x48c   :  { %v734_v0 = vpop.eup %733  ;;  %v529_v1 = vadd.f32 %v526_v63, %v448_v62 }
 0x48d   :  { %461 = vmatmul.f32.gmra.mxu2 %v734_v0 }
 0x48e   :  { %735 = vtanh.f32 %v529_v1 }
 0x494   :  { %v736_v2 = vpop.eup %735 }
 0x495   :  { %547 = vmatmul.f32.vlgmr.msrb.gmra.mxu3 %v736_v2 }
 0x510   :  { %v462_v26 = vpop.f32.mrf.mxu2 }
 0x511   :  { %v463_v41 = vadd.f32 %v1333_v40, %v462_v26 }
 0x518   :  { %v548_v5 = vpop.f32.mrf.mxu3 }
 0x519   :  { %v551_v6 = vadd.f32 %v548_v5, %v451_v4 }
 0x51b   :  { %737 = vtanh.f32 %v551_v6 }
 0x521   :  { %v738_v35 = vpop.eup %737 }
 0x522   :  { %569 = vmatmul.f32.vlgmr.msrb.gmra.mxu0 %v738_v35 }
 0x59f   :  { %v570_v9 = vpop.f32.mrf.mxu0 }
 0x5a0   :  { %v573_v10 = vadd.f32 %v570_v9, %v454_v8 }
 0x5a2   :  { %739 = vtanh.f32 %v573_v10 }
 0x5a8   :  { %v740_v11 = vpop.eup %739 }
 0x5a9   :  { %591 = vmatmul.f32.vlgmr.msra.gmra.mxu1 %v740_v11 }
 0x626   :  { %v592_v14 = vpop.f32.mrf.mxu1 }
 0x627   :  { %v595_v15 = vadd.f32 %v592_v14, %v457_v13 }
 0x629   :  { %741 = vtanh.f32 %v595_v15 }
 0x62f   :  { %v742_v16 = vpop.eup %741 }
 0x630   :  { %613 = vmatmul.f32.vlgmr.msrb.gmra.mxu2 %v742_v16 }
 0x6b3   :  { %v614_v31 = vpop.f32.mrf.mxu2 }
 0x6b4   :  { %v617_v32 = vadd.f32 %v614_v31, %v460_v30 }
 0x6b6   :  { %743 = vtanh.f32 %v617_v32 }
 0x6bc   :  { %v744_v34 = vpop.eup %743 }
 0x6bd   :  { %635 = vmatmul.f32.vlgmr.msra.gmra.mxu3 %v744_v34 }
 0x740   :  { %v636_v42 = vpop.f32.mrf.mxu3 }
 0x741   :  { %v639_v43 = vadd.f32 %v636_v42, %v463_v41 }
 0x743   :  { %745 = vtanh.f32 %v639_v43 }
 0x749   :  { %v746_v44 = vpop.eup %745 }
 0x74a   :  { %677 = vmatmul.f32.vlgmr.msra.gmra.mxu0 %v746_v44 }
 0x7c7   :  { %v678_v46 = vpop.f32.mrf.mxu0 }
 0x7c8   :  { %v679_v47 = vadd.f32 %v714_v45, %v678_v46 }
 0x7ca   :  { %681 = vst [vmem:[#allocation13] sm:$0xff] %v679_v47 }
 0x7cb   :  { %692 = dma.vmem_to_hbm [thread:$0]  %s688_s19, 128, %s690_s22, [#allocation4]  }
 0x7cc   :  { %923 = dma.done.wait [#allocation4], 128  }
 0x7cd   :  { %924 = vsyncadd [#allocation4], 4294967168 }
 0x7ce   :  { %697 = vsyncpa [#allocation3], 1 }
 0x7cf   :  { %698 = vsyncpa [#allocation6], 1 }
 0x7d0   :  { %699 = vsyncpa [#allocation9], 1 }
 0x7d1   :  { %700 = vsyncpa [#allocation12], 1 }
 0x7d2   :  { %701 = vsyncpa [#allocation4], 1 }

</bundles_post_ra>
